<compile_context>
chip_gen: v7x
topology: tpu7x:2x2x1
jax: 0.10.0
libtpu: 0.0.40
codegen_flags: <defaults>
</compile_context>

<pallas_src>
import functools

import jax
import jax.numpy as jnp
from jax.experimental import pallas as pl
from jax.experimental.pallas import tpu as pltpu


IMG_DIM = 960


def _round_up(x, m):
    return (x + m - 1) // m * m


def qnet_kernel(
    compass_ref, image_ref,
    w1_ref, b1_ref, w2_ref, b2_ref,                        # mlp (compass) branch
    wc1_ref, bc1_ref, wc2_ref, bc2_ref, wc3_ref, bc3_ref,  # "cnn" (image) branch
    wq_c_ref, wq_i_ref, bq_ref,                            # Q head, split over the concat
    out_ref,
):
    f32 = jnp.float32
    bf16 = jnp.bfloat16

    # ---- compass branch: Linear -> tanh -> Linear -> tanh ----
    c = compass_ref[...].astype(bf16)                       # cast in-kernel (native f32 input)
    h = jnp.tanh(jnp.dot(c, w1_ref[...], preferred_element_type=f32) + b1_ref[...])
    c_feat = jnp.tanh(
        jnp.dot(h.astype(bf16), w2_ref[...], preferred_element_type=f32) + b2_ref[...])

    # ---- image branch: Linear -> ReLU (x3) ----
    x = image_ref[...].astype(bf16)                         # (TILE_B, 960), cast in-kernel
    h = jnp.maximum(
        jnp.dot(x, wc1_ref[...], preferred_element_type=f32) + bc1_ref[...], 0.0)
    h = jnp.maximum(
        jnp.dot(h.astype(bf16), wc2_ref[...], preferred_element_type=f32) + bc2_ref[...], 0.0)
    i_feat = jnp.maximum(
        jnp.dot(h.astype(bf16), wc3_ref[...], preferred_element_type=f32) + bc3_ref[...], 0.0)

    # ---- Q head on concat(c_feat, i_feat) ----
    # Q(concat) == c_feat @ Wq[:64] + i_feat @ Wq[64:] + bq   (exact split)
    q = (jnp.dot(c_feat.astype(bf16), wq_c_ref[...], preferred_element_type=f32)
         + jnp.dot(i_feat.astype(bf16), wq_i_ref[...], preferred_element_type=f32)
         + bq_ref[...])
    out_ref[...] = q.astype(out_ref.dtype)


@functools.partial(jax.jit, static_argnames=("tile_b",))
def q_net_forward(compass, image, kparams, *, tile_b=1024):
    """compass: (B, state_dim); image: (B, 960).  Native dtype (f32 or bf16) — no
    wrapper-side pad/cast; the kernel casts to bf16 just before the first matmul.

    kparams: kernel-ready params (bf16 weights, f32 biases, wq split into wq_c/wq_i)
    as produced by prepare_kernel_params().
    """
    B, state_dim = compass.shape
    action_dim = kparams["bq"].shape[-1]

    # Tile selection:
    #   * multiple of 8 (sublane alignment) when B is large enough,
    #   * capped at cdiv(B, 2) so the grid has >= 2 steps whenever possible
    #     (keeps both v7x TensorCores busy under "parallel"),
    #   * no batch padding — the last partial block is masked by Pallas.
    if B >= 16:
        tile_b = max(8, min(_round_up(tile_b, 8), _round_up(pl.cdiv(B, 2), 8)))
    else:
        tile_b = B  # single block; block dim == full array dim is always legal
    n_tiles = pl.cdiv(B, tile_b)

    weight_args = (
        kparams["w1"], kparams["b1"], kparams["w2"], kparams["b2"],
        kparams["wc1"], kparams["bc1"], kparams["wc2"], kparams["bc2"],
        kparams["wc3"], kparams["bc3"],
        kparams["wq_c"], kparams["wq_i"], kparams["bq"],
    )

    # Activations tiled over the batch grid; weights/biases VMEM-resident
    # (block index never changes -> DMA'd once).
    act_spec_compass = pl.BlockSpec((tile_b, state_dim), lambda i: (i, 0))
    # If xprof shows exposed image DMA at step boundaries on v6e, add
    # pipeline_mode=pl.Buffered(3) to this spec.
    act_spec_image = pl.BlockSpec((tile_b, IMG_DIM), lambda i: (i, 0))
    weight_specs = [pl.BlockSpec(w.shape, lambda i: (0, 0)) for w in weight_args]
    out_spec = pl.BlockSpec((tile_b, action_dim), lambda i: (i, 0))

    out = pl.pallas_call(
        qnet_kernel,
        out_shape=jax.ShapeDtypeStruct((B, action_dim), jnp.float32),
        grid=(n_tiles,),
        in_specs=[act_spec_compass, act_spec_image] + weight_specs,
        out_specs=out_spec,
        compiler_params=pltpu.CompilerParams(
            dimension_semantics=("parallel",),
            # ~11-12 MiB footprint at tile_b=1024 with f32 image tiles; raise the
            # scoped limit past v5e's 16 MiB default (32 MiB is < physical VMEM
            # on v5e/v6e/v7x).
            vmem_limit_bytes=32 * 1024 * 1024),
    )(compass, image, *weight_args)

    return out


# ---------------------------------------------------------------------------
# Parameter construction (PyTorch nn.Linear default init) + reference.
# ---------------------------------------------------------------------------

def init_linear(key, fan_in, fan_out):
    # PyTorch nn.Linear default: U(-1/sqrt(fan_in), 1/sqrt(fan_in)) for W and b.
    kw, kb = jax.random.split(key)
    bound = 1.0 / jnp.sqrt(jnp.float32(fan_in))
    w = jax.random.uniform(kw, (fan_in, fan_out), jnp.float32, -bound, bound)
    b = jax.random.uniform(kb, (1, fan_out), jnp.float32, -bound, bound)
    return w, b


def make_params(key, state_dim, action_dim):
    keys = jax.random.split(key, 6)
    w1, b1 = init_linear(keys[0], state_dim, 64)
    w2, b2 = init_linear(keys[1], 64, 64)
    wc1, bc1 = init_linear(keys[2], IMG_DIM, 256)
    wc2, bc2 = init_linear(keys[3], 256, 128)
    wc3, bc3 = init_linear(keys[4], 128, 64)
    wq, bq = init_linear(keys[5], 128, action_dim)      # out_size = 64 + 64 (mode='mixed')
    return dict(
        w1=w1, b1=b1, w2=w2, b2=b2,
        wc1=wc1, bc1=bc1, wc2=wc2, bc2=bc2, wc3=wc3, bc3=bc3,
        wq=wq, bq=bq,
    )


def prepare_kernel_params(params):
    """Cast weights to bf16 (biases stay f32) and split wq over the concat.
    wc1 stays at its true 960 rows (no padding)."""
    bf16 = jnp.bfloat16
    return dict(
        w1=params["w1"].astype(bf16), b1=params["b1"],
        w2=params["w2"].astype(bf16), b2=params["b2"],
        wc1=params["wc1"].astype(bf16), bc1=params["bc1"],
        wc2=params["wc2"].astype(bf16), bc2=params["bc2"],
        wc3=params["wc3"].astype(bf16), bc3=params["bc3"],
        wq_c=params["wq"][:64, :].astype(bf16),
        wq_i=params["wq"][64:, :].astype(bf16),
        bq=params["bq"],
    )


def q_net_reference(compass, image, params, quantize_weights=True):
    # Plain-JAX f32 reference.  With quantize_weights=True, weights go through the
    # same bf16 quantization as the kernel so only activation-rounding differs.
    def w(x):
        return x.astype(jnp.bfloat16).astype(jnp.float32) if quantize_weights else x
    h = jnp.tanh(compass @ w(params["w1"]) + params["b1"])
    c_feat = jnp.tanh(h @ w(params["w2"]) + params["b2"])
    h = jax.nn.relu(image @ w(params["wc1"]) + params["bc1"])
    h = jax.nn.relu(h @ w(params["wc2"]) + params["bc2"])
    i_feat = jax.nn.relu(h @ w(params["wc3"]) + params["bc3"])
    feats = jnp.concatenate([c_feat, i_feat], axis=-1)
    return feats @ w(params["wq"]) + params["bq"]


if __name__ == "__main__":
    key = jax.random.PRNGKey(0)
    k_params, k_compass, k_image = jax.random.split(key, 3)

    B, state_dim, action_dim = 8, 16, 4
    params = make_params(k_params, state_dim, action_dim)
    kparams = prepare_kernel_params(params)

    compass = jax.random.normal(k_compass, (B, state_dim), jnp.float32)
    image = jax.random.normal(k_image, (B, IMG_DIM), jnp.float32)

    q = q_net_forward(compass, image, kparams)
    q = jax.block_until_ready(q)

    q_ref = q_net_reference(compass, image, params)
    assert q.shape == (B, action_dim)
    # bf16 matmul operands -> loosened tolerance vs the (weight-quantized) f32 reference.
    assert jnp.allclose(q, q_ref, atol=2e-2, rtol=2e-2), float(jnp.max(jnp.abs(q - q_ref)))

    print("KERNEL_OK")
</pallas_src>

<mosaic_0001>
module attributes {stable_mosaic.version = 11 : i64} {
  func.func @qnet_kernel(%arg0: i32, %arg1: memref<8x16xf32, #tpu.memory_space<vmem>>, %arg2: memref<8x960xf32, #tpu.memory_space<vmem>>, %arg3: memref<16x64xbf16, #tpu.memory_space<vmem>>, %arg4: memref<1x64xf32, #tpu.memory_space<vmem>>, %arg5: memref<64x64xbf16, #tpu.memory_space<vmem>>, %arg6: memref<1x64xf32, #tpu.memory_space<vmem>>, %arg7: memref<960x256xbf16, #tpu.memory_space<vmem>>, %arg8: memref<1x256xf32, #tpu.memory_space<vmem>>, %arg9: memref<256x128xbf16, #tpu.memory_space<vmem>>, %arg10: memref<1x128xf32, #tpu.memory_space<vmem>>, %arg11: memref<128x64xbf16, #tpu.memory_space<vmem>>, %arg12: memref<1x64xf32, #tpu.memory_space<vmem>>, %arg13: memref<64x4xbf16, #tpu.memory_space<vmem>>, %arg14: memref<64x4xbf16, #tpu.memory_space<vmem>>, %arg15: memref<1x4xf32, #tpu.memory_space<vmem>>, %arg16: memref<8x4xf32, #tpu.memory_space<vmem>>) attributes {dimension_semantics = [#tpu.dimension_semantics<parallel>], iteration_bounds = array<i64: 1>, scalar_prefetch = 0 : i64, scratch_operands = 0 : i64, tpu.core_type = #tpu.core_type<tc>, window_params = [{transform_indices = @transform_0, window_bounds = array<i64: 8, 16>}, {transform_indices = @transform_1, window_bounds = array<i64: 8, 960>}, {pipeline_mode = #tpu.pipeline_mode<synchronous>, transform_indices = @transform_2, window_bounds = array<i64: 16, 64>}, {pipeline_mode = #tpu.pipeline_mode<synchronous>, transform_indices = @transform_3, window_bounds = array<i64: 1, 64>}, {pipeline_mode = #tpu.pipeline_mode<synchronous>, transform_indices = @transform_4, window_bounds = array<i64: 64, 64>}, {pipeline_mode = #tpu.pipeline_mode<synchronous>, transform_indices = @transform_5, window_bounds = array<i64: 1, 64>}, {pipeline_mode = #tpu.pipeline_mode<synchronous>, transform_indices = @transform_6, window_bounds = array<i64: 960, 256>}, {pipeline_mode = #tpu.pipeline_mode<synchronous>, transform_indices = @transform_7, window_bounds = array<i64: 1, 256>}, {pipeline_mode = #tpu.pipeline_mode<synchronous>, transform_indices = @transform_8, window_bounds = array<i64: 256, 128>}, {pipeline_mode = #tpu.pipeline_mode<synchronous>, transform_indices = @transform_9, window_bounds = array<i64: 1, 128>}, {pipeline_mode = #tpu.pipeline_mode<synchronous>, transform_indices = @transform_10, window_bounds = array<i64: 128, 64>}, {pipeline_mode = #tpu.pipeline_mode<synchronous>, transform_indices = @transform_11, window_bounds = array<i64: 1, 64>}, {pipeline_mode = #tpu.pipeline_mode<synchronous>, transform_indices = @transform_12, window_bounds = array<i64: 64, 4>}, {pipeline_mode = #tpu.pipeline_mode<synchronous>, transform_indices = @transform_13, window_bounds = array<i64: 64, 4>}, {pipeline_mode = #tpu.pipeline_mode<synchronous>, transform_indices = @transform_14, window_bounds = array<i64: 1, 4>}, {transform_indices = @transform_15, window_bounds = array<i64: 8, 4>}]} {
    %c0 = arith.constant 0 : index
    %c0_0 = arith.constant 0 : index
    %0 = vector.load %arg1[%c0, %c0_0] : memref<8x16xf32, #tpu.memory_space<vmem>>, vector<8x16xf32>
    %1 = arith.truncf %0 : vector<8x16xf32> to vector<8x16xbf16>
    %c0_1 = arith.constant 0 : index
    %c0_2 = arith.constant 0 : index
    %2 = vector.load %arg3[%c0_1, %c0_2] : memref<16x64xbf16, #tpu.memory_space<vmem>>, vector<16x64xbf16>
    %cst = arith.constant dense<0.000000e+00> : vector<8x64xf32>
    %3 = tpu.matmul %1, %2, %cst {dimension_numbers = #tpu.dot_dimension_numbers<[1], [0], [0], [1], [0, 0, 1, 1], [], []>} : vector<8x16xbf16>, vector<16x64xbf16>, vector<8x64xf32> -> vector<8x64xf32>
    %c0_3 = arith.constant 0 : index
    %c0_4 = arith.constant 0 : index
    %4 = vector.load %arg4[%c0_3, %c0_4] : memref<1x64xf32, #tpu.memory_space<vmem>>, vector<1x64xf32>
    %5 = vector.broadcast %4 : vector<1x64xf32> to vector<8x64xf32>
    %6 = arith.addf %3, %5 : vector<8x64xf32>
    %7 = math.tanh %6 : vector<8x64xf32>
    %8 = arith.truncf %7 : vector<8x64xf32> to vector<8x64xbf16>
    %c0_5 = arith.constant 0 : index
    %c0_6 = arith.constant 0 : index
    %9 = vector.load %arg5[%c0_5, %c0_6] : memref<64x64xbf16, #tpu.memory_space<vmem>>, vector<64x64xbf16>
    %cst_7 = arith.constant dense<0.000000e+00> : vector<8x64xf32>
    %10 = tpu.matmul %8, %9, %cst_7 {dimension_numbers = #tpu.dot_dimension_numbers<[1], [0], [0], [1], [0, 0, 1, 1], [], []>} : vector<8x64xbf16>, vector<64x64xbf16>, vector<8x64xf32> -> vector<8x64xf32>
    %c0_8 = arith.constant 0 : index
    %c0_9 = arith.constant 0 : index
    %11 = vector.load %arg6[%c0_8, %c0_9] : memref<1x64xf32, #tpu.memory_space<vmem>>, vector<1x64xf32>
    %12 = vector.broadcast %11 : vector<1x64xf32> to vector<8x64xf32>
    %13 = arith.addf %10, %12 : vector<8x64xf32>
    %14 = math.tanh %13 : vector<8x64xf32>
    %c0_10 = arith.constant 0 : index
    %c0_11 = arith.constant 0 : index
    %15 = vector.load %arg2[%c0_10, %c0_11] : memref<8x960xf32, #tpu.memory_space<vmem>>, vector<8x960xf32>
    %16 = arith.truncf %15 : vector<8x960xf32> to vector<8x960xbf16>
    %c0_12 = arith.constant 0 : index
    %c0_13 = arith.constant 0 : index
    %17 = vector.load %arg7[%c0_12, %c0_13] : memref<960x256xbf16, #tpu.memory_space<vmem>>, vector<960x256xbf16>
    %cst_14 = arith.constant dense<0.000000e+00> : vector<8x256xf32>
    %18 = tpu.matmul %16, %17, %cst_14 {dimension_numbers = #tpu.dot_dimension_numbers<[1], [0], [0], [1], [0, 0, 1, 1], [], []>} : vector<8x960xbf16>, vector<960x256xbf16>, vector<8x256xf32> -> vector<8x256xf32>
    %c0_15 = arith.constant 0 : index
    %c0_16 = arith.constant 0 : index
    %19 = vector.load %arg8[%c0_15, %c0_16] : memref<1x256xf32, #tpu.memory_space<vmem>>, vector<1x256xf32>
    %20 = vector.broadcast %19 : vector<1x256xf32> to vector<8x256xf32>
    %21 = arith.addf %18, %20 : vector<8x256xf32>
    %cst_17 = arith.constant 0.000000e+00 : f32
    %22 = vector.broadcast %cst_17 : f32 to vector<8x256xf32>
    %23 = arith.maximumf %21, %22 : vector<8x256xf32>
    %24 = arith.truncf %23 : vector<8x256xf32> to vector<8x256xbf16>
    %c0_18 = arith.constant 0 : index
    %c0_19 = arith.constant 0 : index
    %25 = vector.load %arg9[%c0_18, %c0_19] : memref<256x128xbf16, #tpu.memory_space<vmem>>, vector<256x128xbf16>
    %cst_20 = arith.constant dense<0.000000e+00> : vector<8x128xf32>
    %26 = tpu.matmul %24, %25, %cst_20 {dimension_numbers = #tpu.dot_dimension_numbers<[1], [0], [0], [1], [0, 0, 1, 1], [], []>} : vector<8x256xbf16>, vector<256x128xbf16>, vector<8x128xf32> -> vector<8x128xf32>
    %c0_21 = arith.constant 0 : index
    %c0_22 = arith.constant 0 : index
    %27 = vector.load %arg10[%c0_21, %c0_22] : memref<1x128xf32, #tpu.memory_space<vmem>>, vector<1x128xf32>
    %28 = vector.broadcast %27 : vector<1x128xf32> to vector<8x128xf32>
    %29 = arith.addf %26, %28 : vector<8x128xf32>
    %cst_23 = arith.constant 0.000000e+00 : f32
    %30 = vector.broadcast %cst_23 : f32 to vector<8x128xf32>
    %31 = arith.maximumf %29, %30 : vector<8x128xf32>
    %32 = arith.truncf %31 : vector<8x128xf32> to vector<8x128xbf16>
    %c0_24 = arith.constant 0 : index
    %c0_25 = arith.constant 0 : index
    %33 = vector.load %arg11[%c0_24, %c0_25] : memref<128x64xbf16, #tpu.memory_space<vmem>>, vector<128x64xbf16>
    %cst_26 = arith.constant dense<0.000000e+00> : vector<8x64xf32>
    %34 = tpu.matmul %32, %33, %cst_26 {dimension_numbers = #tpu.dot_dimension_numbers<[1], [0], [0], [1], [0, 0, 1, 1], [], []>} : vector<8x128xbf16>, vector<128x64xbf16>, vector<8x64xf32> -> vector<8x64xf32>
    %c0_27 = arith.constant 0 : index
    %c0_28 = arith.constant 0 : index
    %35 = vector.load %arg12[%c0_27, %c0_28] : memref<1x64xf32, #tpu.memory_space<vmem>>, vector<1x64xf32>
    %36 = vector.broadcast %35 : vector<1x64xf32> to vector<8x64xf32>
    %37 = arith.addf %34, %36 : vector<8x64xf32>
    %cst_29 = arith.constant 0.000000e+00 : f32
    %38 = vector.broadcast %cst_29 : f32 to vector<8x64xf32>
    %39 = arith.maximumf %37, %38 : vector<8x64xf32>
    %40 = arith.truncf %14 : vector<8x64xf32> to vector<8x64xbf16>
    %c0_30 = arith.constant 0 : index
    %c0_31 = arith.constant 0 : index
    %41 = vector.load %arg13[%c0_30, %c0_31] : memref<64x4xbf16, #tpu.memory_space<vmem>>, vector<64x4xbf16>
    %cst_32 = arith.constant dense<0.000000e+00> : vector<8x4xf32>
    %42 = tpu.matmul %40, %41, %cst_32 {dimension_numbers = #tpu.dot_dimension_numbers<[1], [0], [0], [1], [0, 0, 1, 1], [], []>} : vector<8x64xbf16>, vector<64x4xbf16>, vector<8x4xf32> -> vector<8x4xf32>
    %43 = arith.truncf %39 : vector<8x64xf32> to vector<8x64xbf16>
    %c0_33 = arith.constant 0 : index
    %c0_34 = arith.constant 0 : index
    %44 = vector.load %arg14[%c0_33, %c0_34] : memref<64x4xbf16, #tpu.memory_space<vmem>>, vector<64x4xbf16>
    %cst_35 = arith.constant dense<0.000000e+00> : vector<8x4xf32>
    %45 = tpu.matmul %43, %44, %cst_35 {dimension_numbers = #tpu.dot_dimension_numbers<[1], [0], [0], [1], [0, 0, 1, 1], [], []>} : vector<8x64xbf16>, vector<64x4xbf16>, vector<8x4xf32> -> vector<8x4xf32>
    %46 = arith.addf %42, %45 : vector<8x4xf32>
    %c0_36 = arith.constant 0 : index
    %c0_37 = arith.constant 0 : index
    %47 = vector.load %arg15[%c0_36, %c0_37] : memref<1x4xf32, #tpu.memory_space<vmem>>, vector<1x4xf32>
    %48 = vector.broadcast %47 : vector<1x4xf32> to vector<8x4xf32>
    %49 = arith.addf %46, %48 : vector<8x4xf32>
    %c0_38 = arith.constant 0 : index
    %c0_39 = arith.constant 0 : index
    %50 = vector.load %arg16[%c0_38, %c0_39] : memref<8x4xf32, #tpu.memory_space<vmem>>, vector<8x4xf32>
    tpu.vector_store %arg16[%c0_38, %c0_39], %49 {strides = array<i32>} : memref<8x4xf32, #tpu.memory_space<vmem>>, vector<8x4xf32>,
    return
  }
  func.func @transform_0(%arg0: i32) -> (i32, i32) {
    %c0_i32 = arith.constant 0 : i32
    %c0_i32_0 = arith.constant 0 : i32
    return %arg0, %c0_i32 : i32, i32
  }
  func.func @transform_1(%arg0: i32) -> (i32, i32) {
    %c0_i32 = arith.constant 0 : i32
    %c0_i32_0 = arith.constant 0 : i32
    return %arg0, %c0_i32 : i32, i32
  }
  func.func @transform_2(%arg0: i32) -> (i32, i32) {
    %c0_i32 = arith.constant 0 : i32
    %c0_i32_0 = arith.constant 0 : i32
    %c0_i32_1 = arith.constant 0 : i32
    return %c0_i32, %c0_i32_0 : i32, i32
  }
  func.func @transform_3(%arg0: i32) -> (i32, i32) {
    %c0_i32 = arith.constant 0 : i32
    %c0_i32_0 = arith.constant 0 : i32
    %c0_i32_1 = arith.constant 0 : i32
    return %c0_i32, %c0_i32_0 : i32, i32
  }
  func.func @transform_4(%arg0: i32) -> (i32, i32) {
    %c0_i32 = arith.constant 0 : i32
    %c0_i32_0 = arith.constant 0 : i32
    %c0_i32_1 = arith.constant 0 : i32
    return %c0_i32, %c0_i32_0 : i32, i32
  }
  func.func @transform_5(%arg0: i32) -> (i32, i32) {
    %c0_i32 = arith.constant 0 : i32
    %c0_i32_0 = arith.constant 0 : i32
    %c0_i32_1 = arith.constant 0 : i32
    return %c0_i32, %c0_i32_0 : i32, i32
  }
  func.func @transform_6(%arg0: i32) -> (i32, i32) {
    %c0_i32 = arith.constant 0 : i32
    %c0_i32_0 = arith.constant 0 : i32
    %c0_i32_1 = arith.constant 0 : i32
    return %c0_i32, %c0_i32_0 : i32, i32
  }
  func.func @transform_7(%arg0: i32) -> (i32, i32) {
    %c0_i32 = arith.constant 0 : i32
    %c0_i32_0 = arith.constant 0 : i32
    %c0_i32_1 = arith.constant 0 : i32
    return %c0_i32, %c0_i32_0 : i32, i32
  }
  func.func @transform_8(%arg0: i32) -> (i32, i32) {
    %c0_i32 = arith.constant 0 : i32
    %c0_i32_0 = arith.constant 0 : i32
    %c0_i32_1 = arith.constant 0 : i32
    return %c0_i32, %c0_i32_0 : i32, i32
  }
  func.func @transform_9(%arg0: i32) -> (i32, i32) {
    %c0_i32 = arith.constant 0 : i32
    %c0_i32_0 = arith.constant 0 : i32
    %c0_i32_1 = arith.constant 0 : i32
    return %c0_i32, %c0_i32_0 : i32, i32
  }
  func.func @transform_10(%arg0: i32) -> (i32, i32) {
    %c0_i32 = arith.constant 0 : i32
    %c0_i32_0 = arith.constant 0 : i32
    %c0_i32_1 = arith.constant 0 : i32
    return %c0_i32, %c0_i32_0 : i32, i32
  }
  func.func @transform_11(%arg0: i32) -> (i32, i32) {
    %c0_i32 = arith.constant 0 : i32
    %c0_i32_0 = arith.constant 0 : i32
    %c0_i32_1 = arith.constant 0 : i32
    return %c0_i32, %c0_i32_0 : i32, i32
  }
  func.func @transform_12(%arg0: i32) -> (i32, i32) {
    %c0_i32 = arith.constant 0 : i32
    %c0_i32_0 = arith.constant 0 : i32
    %c0_i32_1 = arith.constant 0 : i32
    return %c0_i32, %c0_i32_0 : i32, i32
  }
  func.func @transform_13(%arg0: i32) -> (i32, i32) {
    %c0_i32 = arith.constant 0 : i32
    %c0_i32_0 = arith.constant 0 : i32
    %c0_i32_1 = arith.constant 0 : i32
    return %c0_i32, %c0_i32_0 : i32, i32
  }
  func.func @transform_14(%arg0: i32) -> (i32, i32) {
    %c0_i32 = arith.constant 0 : i32
    %c0_i32_0 = arith.constant 0 : i32
    %c0_i32_1 = arith.constant 0 : i32
    return %c0_i32, %c0_i32_0 : i32, i32
  }
  func.func @transform_15(%arg0: i32) -> (i32, i32) {
    %c0_i32 = arith.constant 0 : i32
    %c0_i32_0 = arith.constant 0 : i32
    return %arg0, %c0_i32 : i32, i32
  }
}

</mosaic_0001>

<bundles_post_ra>
// kernel: q_net_forward.1
= control target key start
LH: loop header
LB: loop body
LE: loop exit
PB: predicated region body
PF: predicated region fallthrough
CT: control target
= control target key end

     0   :  { %20 = vsyncpa [#allocation3], 0  ;;  %s2624_s0 = inlined_call_operand.vmem [shape: f32[8,16], index: 0, kind: input, shape index: {}]   ;;  %s2625_s1 = inlined_call_operand.vmem [shape: f32[8,960], index: 1, kind: input, shape index: {}]   ;;  %s2626_s2 = inlined_call_operand.hbm [shape: bf16[16,64], index: 2, kind: input, shape index: {}]   ;;  %s2627_s3 = inlined_call_operand.vmem [shape: f32[1,64], index: 3, kind: input, shape index: {}]   ;;  %s2628_s4 = inlined_call_operand.hbm [shape: bf16[64,64], index: 4, kind: input, shape index: {}]   ;;  %s2629_s5 = inlined_call_operand.vmem [shape: f32[1,64], index: 5, kind: input, shape index: {}]   ;;  %s2630_s6 = inlined_call_operand.hbm [shape: bf16[960,256], index: 6, kind: input, shape index: {}]   ;;  %s2631_s7 = inlined_call_operand.vmem [shape: f32[1,256], index: 7, kind: input, shape index: {}]   ;;  %s2632_s8 = inlined_call_operand.vmem [shape: bf16[256,128], index: 8, kind: input, shape index: {}]   ;;  %s2633_s9 = inlined_call_operand.vmem [shape: f32[1,128], index: 9, kind: input, shape index: {}]   ;;  %s2634_s10 = inlined_call_operand.vmem [shape: bf16[128,64], index: 10, kind: input, shape index: {}]   ;;  %s2635_s11 = inlined_call_operand.hbm [shape: f32[1,64], index: 11, kind: input, shape index: {}]   ;;  %s2636_s12 = inlined_call_operand.vmem [shape: bf16[64,4], index: 12, kind: input, shape index: {}]   ;;  %s2637_s13 = inlined_call_operand.vmem [shape: bf16[64,4], index: 13, kind: input, shape index: {}]   ;;  %s2638_s14 = inlined_call_operand.hbm [shape: f32[1,4], index: 14, kind: input, shape index: {}]   ;;  %s2639_s15 = inlined_call_operand.vmem [shape: f32[8,4], index: 15, kind: output, shape index: {}]  }
   0x1   :  { %21 = vsyncpa [#allocation5], 0 }
   0x2   :  { %22 = vsyncpa [#allocation8], 0  ;;  %s2276_s18 = smov [#allocation4]   ;;  %s2277_s20 = smov [#allocation7]  }
   0x3   :  { %s46_s19 = sshll.u32 %s2276_s18, 4  ;;  %s81_s21 = sshll.u32 %s2277_s20, 4  ;;  %s47_s19 = int_to_ptr.vmem [resolvable:$true] %s46_s19  ;;  %s2367_s21 = int_to_ptr.vmem [resolvable:$true] %s81_s21 }
   0x4   :  { %s2160_s24 = scalar_lea.hbm %s2628_s4, 512 }
   0x5   :  { %p2161_p0 = scmp.ne.s32.totalorder %s2628_s4, %s2160_s24  ;;  %p2164_p1 = scmp.lt.u32.totalorder %s2160_s24, %s2628_s4 }
   0x7   :  { %p2166_p2 = pnand %p2164_p1, %p2161_p0 }
   0x9   :  { %2169 = shalt.err (!%p2166_p2)
}
   0xa   :  { %s2170_s29 = scalar_lea.vmem %s47_s19, 512  ;;  %p2175_p4 = scmp.lt.s32.totalorder %s47_s19, %s47_s19 }
   0xb   :  { %p2171_p3 = scmp.ne.s32.totalorder %s47_s19, %s2170_s29  ;;  %p2176_p5 = scmp.lt.s32.totalorder %s2170_s29, %s2170_s29 }
   0xd   :  { %p2177_p6 = por %p2176_p5, %p2175_p4 }
   0xf   :  { %p2178_p7 = pnand %p2177_p6, %p2171_p3 }
  0x11   :  { %2181 = shalt.err (!%p2178_p7)
}
  0x12   :  { %s2278_s30 = smov 64   ;;  %s2279_s16 = smov 4  }
  0x13   :  { %52 = dma.hbm_to_vmem [thread:$0]  %s2628_s4, 512, %s47_s19, [#allocation5], %s2278_s30, %s2278_s30, %s2279_s16  }
  0x14   :  { %s2182_s23 = scalar_lea.hbm %s2635_s11, 16 }
  0x15   :  { %p2183_p8 = scmp.ne.s32.totalorder %s2635_s11, %s2182_s23  ;;  %p2186_p9 = scmp.lt.u32.totalorder %s2182_s23, %s2635_s11 }
  0x17   :  { %p2188_p10 = pnand %p2186_p9, %p2183_p8 }
  0x19   :  { %2191 = shalt.err (!%p2188_p10)
}
  0x1a   :  { %s2192_s28 = scalar_lea.vmem %s2367_s21, 16  ;;  %s2196_s4 = scalar_lea.vmem %s2367_s21, 32 }
  0x1b   :  { %p2193_p11 = scmp.ne.s32.totalorder %s2367_s21, %s2192_s28  ;;  %p2197_p12 = scmp.lt.s32.totalorder %s2367_s21, %s2367_s21 }
  0x1c   :  { %p2198_p13 = scmp.lt.s32.totalorder %s2196_s4, %s2192_s28 }
  0x1e   :  { %p2199_p0 = por %p2198_p13, %p2197_p12 }
  0x20   :  { %p2200_p1 = pnand %p2199_p0, %p2193_p11 }
  0x22   :  { %2203 = shalt.err (!%p2200_p1)
}
  0x23   :  { %84 = dma.hbm_to_vmem [thread:$0]  %s2635_s11, 16, %s2367_s21, [#allocation8]  }
  0x24   :  { %s2280_s17 = smov [#allocation2]   ;;  %s2281_s20 = smov [#allocation6]  }
  0x25   :  { %s32_s18 = sshll.u32 %s2280_s17, 4  ;;  %s60_s22 = sshll.u32 %s2281_s20, 4  ;;  %s33_s18 = int_to_ptr.vmem [resolvable:$true] %s32_s18  ;;  %s2402_s22 = int_to_ptr.vmem [resolvable:$true] %s60_s22 }
  0x26   :  { %s2204_s25 = scalar_lea.hbm %s2626_s2, 128 }
  0x27   :  { %p2205_p2 = scmp.ne.s32.totalorder %s2626_s2, %s2204_s25  ;;  %p2208_p3 = scmp.lt.u32.totalorder %s2204_s25, %s2626_s2 }
  0x29   :  { %p2210_p4 = pnand %p2208_p3, %p2205_p2 }
  0x2b   :  { %2213 = shalt.err (!%p2210_p4)
}
  0x2c   :  { %s2214_s11 = scalar_lea.vmem %s33_s18, 128  ;;  %p2219_p6 = scmp.lt.s32.totalorder %s33_s18, %s33_s18 }
  0x2d   :  { %p2215_p5 = scmp.ne.s32.totalorder %s33_s18, %s2214_s11  ;;  %p2220_p7 = scmp.lt.s32.totalorder %s2214_s11, %s2214_s11 }
  0x2f   :  { %p2221_p8 = por %p2220_p7, %p2219_p6 }
  0x31   :  { %p2222_p9 = pnand %p2221_p8, %p2215_p5 }
  0x33   :  { %2225 = shalt.err (!%p2222_p9)
}
  0x34   :  { %38 = dma.hbm_to_vmem [thread:$0]  %s2626_s2, 128, %s33_s18, [#allocation3], %s2278_s30, %s2278_s30, %s2279_s16  }
  0x35   :  { %s2226_s20 = scalar_lea.hbm %s2630_s6, 15360 }
  0x36   :  { %p2227_p10 = scmp.ne.s32.totalorder %s2630_s6, %s2226_s20  ;;  %p2230_p11 = scmp.lt.u32.totalorder %s2226_s20, %s2630_s6 }
  0x38   :  { %p2232_p12 = pnand %p2230_p11, %p2227_p10 }
  0x3a   :  { %2235 = shalt.err (!%p2232_p12)
}
  0x3b   :  { %s2236_s27 = scalar_lea.vmem %s2402_s22, 15360  ;;  %p2241_p0 = scmp.lt.s32.totalorder %s2402_s22, %s2402_s22 }
  0x3c   :  { %p2237_p13 = scmp.ne.s32.totalorder %s2402_s22, %s2236_s27  ;;  %p2242_p1 = scmp.lt.s32.totalorder %s2236_s27, %s2236_s27 }
  0x3e   :  { %p2243_p2 = por %p2242_p1, %p2241_p0 }
  0x40   :  { %p2244_p3 = pnand %p2243_p2, %p2237_p13 }
  0x42   :  { %2247 = shalt.err (!%p2244_p3)
}
  0x43   :  { %s2282_s2 = smov 128   ;;  %s2283_s30 = smov 8  }
  0x44   :  { %66 = dma.hbm_to_vmem [thread:$0]  %s2630_s6, 15360, %s2402_s22, [#allocation5], %s2282_s2, %s2282_s2, %s2283_s30  }
  0x45   :  { %s2284_s28 = smov [#allocation9]   ;;  %s2248_s19 = scalar_lea.hbm %s2638_s14, 16 }
  0x46   :  { %s95_s4 = sshll.u32 %s2284_s28, 4  ;;  %p2249_p4 = scmp.ne.s32.totalorder %s2638_s14, %s2248_s19  ;;  %s96_s4 = int_to_ptr.vmem [resolvable:$true] %s95_s4 }
  0x47   :  { %p2252_p5 = scmp.lt.u32.totalorder %s2248_s19, %s2638_s14 }
  0x49   :  { %p2254_p6 = pnand %p2252_p5, %p2249_p4 }
  0x4b   :  { %2257 = shalt.err (!%p2254_p6)
}
  0x4c   :  { %s2258_s24 = scalar_lea.vmem %s96_s4, 16  ;;  %s2262_s6 = scalar_lea.vmem %s96_s4, 32 }
  0x4d   :  { %p2259_p7 = scmp.ne.s32.totalorder %s96_s4, %s2258_s24  ;;  %p2263_p8 = scmp.lt.s32.totalorder %s96_s4, %s96_s4 }
  0x4e   :  { %p2264_p9 = scmp.lt.s32.totalorder %s2262_s6, %s2258_s24 }
  0x50   :  { %p2265_p10 = por %p2264_p9, %p2263_p8 }
  0x52   :  { %p2266_p11 = pnand %p2265_p10, %p2259_p7 }
  0x54   :  { %2269 = shalt.err (!%p2266_p11)
}
  0x55   :  { %98 = dma.hbm_to_vmem [thread:$0]  %s2638_s14, 16, %s96_s4, [#allocation8]  }
  0x56   :  { %2270 = dma.done.wait [#allocation3], 128  }
  0x57   :  { %2271 = vsyncadd [#allocation3], 4294967168 }
  0x58   :  { %2272 = dma.done.wait [#allocation5], 15872  }
  0x59   :  { %2273 = vsyncadd [#allocation5], 4294951424 }
  0x5a   :  { %2274 = dma.done.wait [#allocation8], 32  }
  0x5b   :  { %2275 = vsyncadd [#allocation8], 4294967264  ;;  %v2285_v0 = vmov 0.0   ;;  %vm2286_vm0 = vmmov 0   ;;  %v1939_v1 = vld [vmem:[#allocation2] sm:$0xff]   ;;  %vm132_vm1 = vcmask 130048  }
  0x5c   :  { %1854 = vmatprep.subr.bf16.mxu0 %v2285_v0  ;;  %1856 = vmatprep.mubr.msk.bf16.mxu0 %vm2286_vm0, %v2285_v0  ;;  %v115_v2 = vld [vmem:[%s2624_s0] sm:$0xff]  ;;  %v1940_v4 = vld [vmem:[#allocation6 + $0x100] ss:$8 sps:$4 sm:$0xff]   ;;  %v1942_v5 = vld [vmem:[#allocation6 + $0x104] ss:$8 sps:$4 sm:$0xff]   ;;  %vm217_vm2 = vcmask 523264  }
  0x5d   :  { %1860 = vmatprep.subr.bf16.mxu1 %v2285_v0  ;;  %1868 = vmatprep.mubr.msk.bf16.mxu1 %vm2286_vm0, %v2285_v0  ;;  %v116_v3 = vpack.c.bf16 %v115_v2, %v115_v2  ;;  %v1945_v6 = vld [vmem:[#allocation6 + $0x114] ss:$8 sps:$4 sm:$0xff]   ;;  %v1943_v7 = vld [vmem:[#allocation6 + $0x110] ss:$8 sps:$4 sm:$0xff]   ;;  %v1948_v8 = vld [vmem:[#allocation6 + $0x124] ss:$8 sps:$4 sm:$0xff]  }
  0x5e   :  { %1855 = vmatpush3.bf16.msra.mxu0 %v1939_v1  ;;  %v1946_v9 = vld [vmem:[#allocation6 + $0x120] ss:$8 sps:$4 sm:$0xff]   ;;  %v1951_v10 = vld [vmem:[#allocation6 + $0x134] ss:$8 sps:$4 sm:$0xff]   ;;  %v1949_v11 = vld [vmem:[#allocation6 + $0x130] ss:$8 sps:$4 sm:$0xff]  }
  0x5f   :  { %1054 = vmatprep.subr.bf16.mxu0 %v1942_v5  ;;  %v1954_v12 = vld [vmem:[#allocation6 + $0x144] ss:$8 sps:$4 sm:$0xff]   ;;  %v1952_v13 = vld [vmem:[#allocation6 + $0x140] ss:$8 sps:$4 sm:$0xff]   ;;  %v1957_v14 = vld [vmem:[#allocation6 + $0x154] ss:$8 sps:$4 sm:$0xff]  }
  0x60   :  { %v1955_v15 = vld [vmem:[#allocation6 + $0x150] ss:$8 sps:$4 sm:$0xff]   ;;  %v1960_v17 = vld [vmem:[#allocation6 + $0x164] ss:$8 sps:$4 sm:$0xff]   ;;  %v1958_v19 = vld [vmem:[#allocation6 + $0x160] ss:$8 sps:$4 sm:$0xff]  }
  0x61   :  { %1857 = vmatmul.mubr.msk.bf16.vlgmr.msra.gmra.mrb[0].mxu0 %vm132_vm1, %v116_v3  ;;  %v265_v16 = vld [vmem:[%s2625_s1 + $0x18] sm:$0xff]  ;;  %v1966_v22 = vld [vmem:[#allocation6 + $0x184] ss:$8 sps:$4 sm:$0xff]   ;;  %v1964_v23 = vld [vmem:[#allocation6 + $0x180] ss:$8 sps:$4 sm:$0xff]   ;;  %vm1630_vm3 = vcmask 31744  }
  0x62   :  { %1055 = vmatpush1.bf16.msra.mxu0 %v1940_v4  ;;  %v273_v18 = vpack.c.bf16 %v265_v16, %v265_v16  ;;  %v1963_v20 = vld [vmem:[#allocation6 + $0x174] ss:$8 sps:$4 sm:$0xff]   ;;  %v1961_v21 = vld [vmem:[#allocation6 + $0x170] ss:$8 sps:$4 sm:$0xff]   ;;  %v1972_v26 = vld [vmem:[#allocation6 + $0x1a4] ss:$8 sps:$4 sm:$0xff]  }
  0x63   :  { %1056 = vmatprep.subr.bf16.mxu0 %v1945_v6  ;;  %v1969_v24 = vld [vmem:[#allocation6 + $0x194] ss:$8 sps:$4 sm:$0xff]   ;;  %v1967_v25 = vld [vmem:[#allocation6 + $0x190] ss:$8 sps:$4 sm:$0xff]   ;;  %v1970_v27 = vld [vmem:[#allocation6 + $0x1a0] ss:$8 sps:$4 sm:$0xff]  }
  0x64   :  { %1086 = vmatprep.mubr.bf16.mxu0 %v273_v18  ;;  %v1975_v28 = vld [vmem:[#allocation6 + $0x1b4] ss:$8 sps:$4 sm:$0xff]   ;;  %v1973_v29 = vld [vmem:[#allocation6 + $0x1b0] ss:$8 sps:$4 sm:$0xff]   ;;  %v1978_v30 = vld [vmem:[#allocation6 + $0x1c4] ss:$8 sps:$4 sm:$0xff]  }
  0x65   :  { %v1976_v31 = vld [vmem:[#allocation6 + $0x1c0] ss:$8 sps:$4 sm:$0xff]   ;;  %v1981_v32 = vld [vmem:[#allocation6 + $0x1d4] ss:$8 sps:$4 sm:$0xff]   ;;  %v1979_v33 = vld [vmem:[#allocation6 + $0x1d0] ss:$8 sps:$4 sm:$0xff]  }
  0x66   :  { %1057 = vmatpush1.bf16.msra.mxu0 %v1943_v7  ;;  %v1984_v34 = vld [vmem:[#allocation6 + $0x1e4] ss:$8 sps:$4 sm:$0xff]   ;;  %v1982_v35 = vld [vmem:[#allocation6 + $0x1e0] ss:$8 sps:$4 sm:$0xff]   ;;  %v1987_v36 = vld [vmem:[#allocation6 + $0x1f4] ss:$8 sps:$4 sm:$0xff]  }
  0x67   :  { %1058 = vmatprep.subr.bf16.mxu0 %v1948_v8  ;;  %v1985_v37 = vld [vmem:[#allocation6 + $0x1f0] ss:$8 sps:$4 sm:$0xff]   ;;  %v1990_v38 = vld [vmem:[#allocation6 + $0x204] ss:$8 sps:$4 sm:$0xff]   ;;  %v1988_v41 = vld [vmem:[#allocation6 + $0x200] ss:$8 sps:$4 sm:$0xff]  }
  0x68   :  { %v264_v39 = vld [vmem:[%s2625_s1 + $0x10] sm:$0xff]  ;;  %v267_v40 = vld [vmem:[%s2625_s1 + $0x28] sm:$0xff]  ;;  %v1993_v43 = vld [vmem:[#allocation6 + $0x214] ss:$8 sps:$4 sm:$0xff]  }
  0x69   :  { %v272_v42 = vpack.c.bf16 %v264_v39, %v264_v39  ;;  %v275_v44 = vpack.c.bf16 %v267_v40, %v267_v40  ;;  %v1991_v45 = vld [vmem:[#allocation6 + $0x210] ss:$8 sps:$4 sm:$0xff]   ;;  %v1996_v46 = vld [vmem:[#allocation6 + $0x224] ss:$8 sps:$4 sm:$0xff]   ;;  %v1994_v47 = vld [vmem:[#allocation6 + $0x220] ss:$8 sps:$4 sm:$0xff]  }
  0x6a   :  { %1059 = vmatpush1.bf16.msra.mxu0 %v1946_v9  ;;  %v1999_v48 = vld [vmem:[#allocation6 + $0x234] ss:$8 sps:$4 sm:$0xff]   ;;  %v1997_v49 = vld [vmem:[#allocation6 + $0x230] ss:$8 sps:$4 sm:$0xff]   ;;  %v2002_v50 = vld [vmem:[#allocation6 + $0x244] ss:$8 sps:$4 sm:$0xff]  }
  0x6b   :  { %1060 = vmatprep.subr.bf16.mxu0 %v1951_v10  ;;  %v2000_v51 = vld [vmem:[#allocation6 + $0x240] ss:$8 sps:$4 sm:$0xff]   ;;  %v2005_v52 = vld [vmem:[#allocation6 + $0x254] ss:$8 sps:$4 sm:$0xff]   ;;  %v2003_v53 = vld [vmem:[#allocation6 + $0x250] ss:$8 sps:$4 sm:$0xff]  }
  0x6c   :  { %v2008_v54 = vld [vmem:[#allocation6 + $0x264] ss:$8 sps:$4 sm:$0xff]   ;;  %v2006_v56 = vld [vmem:[#allocation6 + $0x260] ss:$8 sps:$4 sm:$0xff]   ;;  %v2011_v57 = vld [vmem:[#allocation6 + $0x274] ss:$8 sps:$4 sm:$0xff]  }
  0x6d   :  { %v2072_v55 = vld [vmem:[#allocation4] sm:$0xff]   ;;  %v2073_v58 = vld [vmem:[#allocation4 + $0x8] sm:$0xff]   ;;  %v2009_v59 = vld [vmem:[#allocation6 + $0x270] ss:$8 sps:$4 sm:$0xff]  }
  0x6e   :  { %1061 = vmatpush1.bf16.msra.mxu0 %v1949_v11  ;;  %1861 = vmatpush3.bf16.msra.mxu1 %v2072_v55  ;;  %v2014_v60 = vld [vmem:[#allocation6 + $0x284] ss:$8 sps:$4 sm:$0xff]   ;;  %v2074_v61 = vld [vmem:[#allocation4 + $0x10] sm:$0xff]   ;;  %v2012_v62 = vld [vmem:[#allocation6 + $0x280] ss:$8 sps:$4 sm:$0xff]  }
  0x6f   :  { %1062 = vmatprep.subr.bf16.mxu0 %v1954_v12  ;;  %1862 = vmatprep.subr.bf16.mxu1 %v2285_v0  ;;  %v2075_v63 = vld [vmem:[#allocation4 + $0x18] sm:$0xff]   ;;  %v2078_v2 = vld [vmem:[#allocation6 + $0x4] ss:$8 sps:$4 sm:$0xff]   ;;  %v2018_v5 = vld [vmem:[#allocation6 + $0x2a0] ss:$8 sps:$4 sm:$0xff]  }
  0x70   :  { %v2017_v1 = vld [vmem:[#allocation6 + $0x294] ss:$8 sps:$4 sm:$0xff]   ;;  %v2015_v3 = vld [vmem:[#allocation6 + $0x290] ss:$8 sps:$4 sm:$0xff]   ;;  %v2020_v4 = vld [vmem:[#allocation6 + $0x2a4] ss:$8 sps:$4 sm:$0xff]  }
  0x71   :  { %v2023_v6 = vld [vmem:[#allocation6 + $0x2b4] ss:$8 sps:$4 sm:$0xff]   ;;  %v2021_v7 = vld [vmem:[#allocation6 + $0x2b0] ss:$8 sps:$4 sm:$0xff]   ;;  %v2026_v8 = vld [vmem:[#allocation6 + $0x2c4] ss:$8 sps:$4 sm:$0xff]  }
  0x72   :  { %1063 = vmatpush1.bf16.msra.mxu0 %v1952_v13  ;;  %1863 = vmatpush3.bf16.msra.mxu1 %v2073_v58  ;;  %v2024_v9 = vld [vmem:[#allocation6 + $0x2c0] ss:$8 sps:$4 sm:$0xff]   ;;  %v2029_v10 = vld [vmem:[#allocation6 + $0x2d4] ss:$8 sps:$4 sm:$0xff]   ;;  %v2027_v11 = vld [vmem:[#allocation6 + $0x2d0] ss:$8 sps:$4 sm:$0xff]  }
  0x73   :  { %1064 = vmatprep.subr.bf16.mxu0 %v1957_v14  ;;  %1864 = vmatprep.subr.bf16.mxu1 %v2285_v0  ;;  %v2032_v12 = vld [vmem:[#allocation6 + $0x2e4] ss:$8 sps:$4 sm:$0xff]   ;;  %v2030_v13 = vld [vmem:[#allocation6 + $0x2e0] ss:$8 sps:$4 sm:$0xff]   ;;  %v2035_v14 = vld [vmem:[#allocation6 + $0x2f4] ss:$8 sps:$4 sm:$0xff]  }
  0x74   :  { %v266_v16 = vld [vmem:[%s2625_s1 + $0x20] sm:$0xff]  ;;  %v269_v18 = vld [vmem:[%s2625_s1 + $0x38] sm:$0xff]  ;;  %v2068_v40 = vld [vmem:[#allocation6 + $0x3a4] ss:$8 sps:$4 sm:$0xff]  }
  0x75   :  { %v2063_v39 = vld [vmem:[#allocation6 + $0x390] ss:$8 sps:$4 sm:$0xff]  }
  0x76   :  { %1065 = vmatpush1.bf16.msra.mxu0 %v1955_v15  ;;  %1865 = vmatpush3.bf16.msra.mxu1 %v2074_v61  ;;  %v2033_v15 = vld [vmem:[#allocation6 + $0x2f0] ss:$8 sps:$4 sm:$0xff]   ;;  %v2087_v61 = vld [vmem:[#allocation6 + $0x34] ss:$8 sps:$4 sm:$0xff]  }
  0x77   :  { %1066 = vmatprep.subr.bf16.mxu0 %v1960_v17  ;;  %1866 = vmatprep.subr.bf16.mxu1 %v2285_v0  ;;  %v2038_v17 = vld [vmem:[#allocation6 + $0x304] ss:$8 sps:$4 sm:$0xff]   ;;  %v2079_v58 = vld [vmem:[#allocation6 + $0x10] ss:$8 sps:$4 sm:$0xff]  }
  0x7a   :  { %1067 = vmatpush1.bf16.msra.mxu0 %v1958_v19  ;;  %1867 = vmatpush3.bf16.msra.mxu1 %v2075_v63  ;;  %v274_v19 = vpack.c.bf16 %v266_v16, %v266_v16  ;;  %v2090_v63 = vld [vmem:[#allocation6 + $0x44] ss:$8 sps:$4 sm:$0xff]  }
  0x7b   :  { %1068 = vmatprep.subr.bf16.mxu0 %v1963_v20  ;;  %1013 = vmatprep.subr.bf16.mxu1 %v2078_v2  ;;  %v2036_v20 = vld [vmem:[#allocation6 + $0x300] ss:$8 sps:$4 sm:$0xff]   ;;  %v2093_v2 = vld [vmem:[#allocation6 + $0x54] ss:$8 sps:$4 sm:$0xff]   ;;  %v2114_v16 = vld [vmem:[#allocation6 + $0xc4] ss:$8 sps:$4 sm:$0xff]  }
  0x7e   :  { %1069 = vmatpush1.bf16.msra.mxu0 %v1961_v21  ;;  %v277_v21 = vpack.c.bf16 %v269_v18, %v269_v18  ;;  %v2117_v18 = vld [vmem:[#allocation6 + $0xd4] ss:$8 sps:$4 sm:$0xff]  }
  0x7f   :  { %1070 = vmatprep.subr.bf16.mxu0 %v1966_v22  ;;  %v2041_v22 = vld [vmem:[#allocation6 + $0x314] ss:$8 sps:$4 sm:$0xff]  }
  0x82   :  { %1071 = vmatpush1.bf16.msra.mxu0 %v1964_v23  ;;  %v2039_v23 = vld [vmem:[#allocation6 + $0x310] ss:$8 sps:$4 sm:$0xff]  }
  0x83   :  { %1072 = vmatprep.subr.bf16.mxu0 %v1969_v24  ;;  %v2044_v24 = vld [vmem:[#allocation6 + $0x324] ss:$8 sps:$4 sm:$0xff]  }
  0x86   :  { %1073 = vmatpush1.bf16.msra.mxu0 %v1967_v25  ;;  %v2042_v25 = vld [vmem:[#allocation6 + $0x320] ss:$8 sps:$4 sm:$0xff]  }
  0x87   :  { %1074 = vmatprep.subr.bf16.mxu0 %v1972_v26  ;;  %v2047_v26 = vld [vmem:[#allocation6 + $0x334] ss:$8 sps:$4 sm:$0xff]  }
  0x8a   :  { %1075 = vmatpush1.bf16.msra.mxu0 %v1970_v27  ;;  %v2045_v27 = vld [vmem:[#allocation6 + $0x330] ss:$8 sps:$4 sm:$0xff]  }
  0x8b   :  { %1076 = vmatprep.subr.bf16.mxu0 %v1975_v28  ;;  %v2050_v28 = vld [vmem:[#allocation6 + $0x344] ss:$8 sps:$4 sm:$0xff]  }
  0x8e   :  { %1077 = vmatpush1.bf16.msra.mxu0 %v1973_v29  ;;  %v2048_v29 = vld [vmem:[#allocation6 + $0x340] ss:$8 sps:$4 sm:$0xff]  }
  0x8f   :  { %1078 = vmatprep.subr.bf16.mxu0 %v1978_v30  ;;  %v2053_v30 = vld [vmem:[#allocation6 + $0x354] ss:$8 sps:$4 sm:$0xff]  }
  0x92   :  { %1079 = vmatpush1.bf16.msra.mxu0 %v1976_v31  ;;  %v2051_v31 = vld [vmem:[#allocation6 + $0x350] ss:$8 sps:$4 sm:$0xff]  }
  0x93   :  { %1080 = vmatprep.subr.bf16.mxu0 %v1981_v32  ;;  %v2056_v32 = vld [vmem:[#allocation6 + $0x364] ss:$8 sps:$4 sm:$0xff]  }
  0x96   :  { %1081 = vmatpush1.bf16.msra.mxu0 %v1979_v33  ;;  %v2054_v33 = vld [vmem:[#allocation6 + $0x360] ss:$8 sps:$4 sm:$0xff]  }
  0x97   :  { %1082 = vmatprep.subr.bf16.mxu0 %v1984_v34  ;;  %v2059_v34 = vld [vmem:[#allocation6 + $0x374] ss:$8 sps:$4 sm:$0xff]  }
  0x9a   :  { %1083 = vmatpush1.bf16.msra.mxu0 %v1982_v35  ;;  %v2057_v35 = vld [vmem:[#allocation6 + $0x370] ss:$8 sps:$4 sm:$0xff]  }
  0x9b   :  { %1084 = vmatprep.subr.bf16.mxu0 %v1987_v36  ;;  %v2062_v36 = vld [vmem:[#allocation6 + $0x384] ss:$8 sps:$4 sm:$0xff]  }
  0x9e   :  { %1085 = vmatpush1.bf16.msra.mxu0 %v1985_v37  ;;  %v2060_v37 = vld [vmem:[#allocation6 + $0x380] ss:$8 sps:$4 sm:$0xff]  }
  0x9f   :  { %1095 = vmatprep.subr.bf16.mxu0 %v1990_v38  ;;  %v2065_v38 = vld [vmem:[#allocation6 + $0x394] ss:$8 sps:$4 sm:$0xff]  }
  0xa1   :  { %1087 = vmatmul.mubr.bf16.vlgmr.msra.gmra.mrb[4].mxu0 %v272_v42  ;;  %v2071_v42 = vld [vmem:[#allocation6 + $0x3b4] ss:$8 sps:$4 sm:$0xff]  }
  0xa2   :  { %1096 = vmatpush1.bf16.msra.mxu0 %v1988_v41  ;;  %1127 = vmatprep.mubr.bf16.mxu0 %v275_v44  ;;  %v2066_v41 = vld [vmem:[#allocation6 + $0x3a0] ss:$8 sps:$4 sm:$0xff]  }
  0xa3   :  { %1097 = vmatprep.subr.bf16.mxu0 %v1993_v43  ;;  %v2069_v43 = vld [vmem:[#allocation6 + $0x3b0] ss:$8 sps:$4 sm:$0xff]   ;;  %v268_v44 = vld [vmem:[%s2625_s1 + $0x30] sm:$0xff] }
  0xa6   :  { %1098 = vmatpush1.bf16.msra.mxu0 %v1991_v45  ;;  %v276_v45 = vpack.c.bf16 %v268_v44, %v268_v44 }
  0xa7   :  { %1099 = vmatprep.subr.bf16.mxu0 %v1996_v46  ;;  %v1639_v46 = vld [vmem:[%s2627_s3] ss:$0 sm:$0xff] }
  0xaa   :  { %1100 = vmatpush1.bf16.msra.mxu0 %v1994_v47 }
  0xab   :  { %1101 = vmatprep.subr.bf16.mxu0 %v1999_v48 }
  0xae   :  { %1102 = vmatpush1.bf16.msra.mxu0 %v1997_v49 }
  0xaf   :  { %1103 = vmatprep.subr.bf16.mxu0 %v2002_v50 }
  0xb2   :  { %1104 = vmatpush1.bf16.msra.mxu0 %v2000_v51 }
  0xb3   :  { %1105 = vmatprep.subr.bf16.mxu0 %v2005_v52  ;;  %v263_v52 = vld [vmem:[%s2625_s1 + $0x8] sm:$0xff] }
  0xb4   :  { %v271_v55 = vpack.c.bf16 %v263_v52, %v263_v52 }
  0xb6   :  { %1106 = vmatpush1.bf16.msra.mxu0 %v2003_v53 }
  0xb7   :  { %1107 = vmatprep.subr.bf16.mxu0 %v2008_v54  ;;  %v2076_v54 = vld [vmem:[#allocation6] ss:$8 sps:$4 sm:$0xff]  }
  0xba   :  { %1108 = vmatpush1.bf16.msra.mxu0 %v2006_v56 }
  0xbb   :  { %1109 = vmatprep.subr.bf16.mxu0 %v2011_v57  ;;  %v2081_v57 = vld [vmem:[#allocation6 + $0x14] ss:$8 sps:$4 sm:$0xff]  }
  0xbe   :  { %1110 = vmatpush1.bf16.msra.mxu0 %v2009_v59  ;;  %v2084_v59 = vld [vmem:[#allocation6 + $0x24] ss:$8 sps:$4 sm:$0xff]  }
  0xbf   :  { %1111 = vmatprep.subr.bf16.mxu0 %v2014_v60  ;;  %v2082_v60 = vld [vmem:[#allocation6 + $0x20] ss:$8 sps:$4 sm:$0xff]  }
  0xc2   :  { %1112 = vmatpush1.bf16.msra.mxu0 %v2012_v62  ;;  %v2085_v62 = vld [vmem:[#allocation6 + $0x30] ss:$8 sps:$4 sm:$0xff]  }
  0xc3   :  { %1113 = vmatprep.subr.bf16.mxu0 %v2017_v1  ;;  %v2088_v1 = vld [vmem:[#allocation6 + $0x40] ss:$8 sps:$4 sm:$0xff]  }
  0xc6   :  { %1114 = vmatpush1.bf16.msra.mxu0 %v2015_v3  ;;  %v2091_v3 = vld [vmem:[#allocation6 + $0x50] ss:$8 sps:$4 sm:$0xff]  }
  0xc7   :  { %1115 = vmatprep.subr.bf16.mxu0 %v2020_v4  ;;  %v2096_v4 = vld [vmem:[#allocation6 + $0x64] ss:$8 sps:$4 sm:$0xff]  }
  0xca   :  { %1116 = vmatpush1.bf16.msra.mxu0 %v2018_v5  ;;  %v2094_v5 = vld [vmem:[#allocation6 + $0x60] ss:$8 sps:$4 sm:$0xff]  }
  0xcb   :  { %1117 = vmatprep.subr.bf16.mxu0 %v2023_v6  ;;  %v2099_v6 = vld [vmem:[#allocation6 + $0x74] ss:$8 sps:$4 sm:$0xff]  }
  0xce   :  { %1118 = vmatpush1.bf16.msra.mxu0 %v2021_v7  ;;  %v2097_v7 = vld [vmem:[#allocation6 + $0x70] ss:$8 sps:$4 sm:$0xff]  }
  0xcf   :  { %1119 = vmatprep.subr.bf16.mxu0 %v2026_v8  ;;  %v2102_v8 = vld [vmem:[#allocation6 + $0x84] ss:$8 sps:$4 sm:$0xff]  }
  0xd2   :  { %1120 = vmatpush1.bf16.msra.mxu0 %v2024_v9  ;;  %v2100_v9 = vld [vmem:[#allocation6 + $0x80] ss:$8 sps:$4 sm:$0xff]  }
  0xd3   :  { %1121 = vmatprep.subr.bf16.mxu0 %v2029_v10  ;;  %v2105_v10 = vld [vmem:[#allocation6 + $0x94] ss:$8 sps:$4 sm:$0xff]  }
  0xd6   :  { %1122 = vmatpush1.bf16.msra.mxu0 %v2027_v11  ;;  %v2103_v11 = vld [vmem:[#allocation6 + $0x90] ss:$8 sps:$4 sm:$0xff]  }
  0xd7   :  { %1123 = vmatprep.subr.bf16.mxu0 %v2032_v12  ;;  %v2108_v12 = vld [vmem:[#allocation6 + $0xa4] ss:$8 sps:$4 sm:$0xff]  }
  0xda   :  { %1124 = vmatpush1.bf16.msra.mxu0 %v2030_v13  ;;  %v2106_v13 = vld [vmem:[#allocation6 + $0xa0] ss:$8 sps:$4 sm:$0xff]  }
  0xdb   :  { %1125 = vmatprep.subr.bf16.mxu0 %v2035_v14  ;;  %v2111_v14 = vld [vmem:[#allocation6 + $0xb4] ss:$8 sps:$4 sm:$0xff]  }
  0xde   :  { %1126 = vmatpush1.bf16.msra.mxu0 %v2033_v15  ;;  %v2109_v15 = vld [vmem:[#allocation6 + $0xb0] ss:$8 sps:$4 sm:$0xff]  }
  0xdf   :  { %1136 = vmatprep.subr.bf16.mxu0 %v2038_v17  ;;  %v2112_v17 = vld [vmem:[#allocation6 + $0xc0] ss:$8 sps:$4 sm:$0xff]  }
  0xe1   :  { %1128 = vmatmul.mubr.bf16.vlgmr.msra.gmra.mrb[4].mxu0 %v274_v19  ;;  %v2115_v19 = vld [vmem:[#allocation6 + $0xd0] ss:$8 sps:$4 sm:$0xff]  }
  0xe2   :  { %1137 = vmatpush1.bf16.msra.mxu0 %v2036_v20  ;;  %1768 = vmatprep.mubr.msk.bf16.mxu0 %vm217_vm2, %v277_v21  ;;  %v2120_v20 = vld [vmem:[#allocation6 + $0xe4] ss:$8 sps:$4 sm:$0xff]   ;;  %v2118_v21 = vld [vmem:[#allocation6 + $0xe0] ss:$8 sps:$4 sm:$0xff]  }
  0xe3   :  { %1138 = vmatprep.subr.bf16.mxu0 %v2041_v22  ;;  %v2123_v22 = vld [vmem:[#allocation6 + $0xf4] ss:$8 sps:$4 sm:$0xff]  }
  0xe6   :  { %1139 = vmatpush1.bf16.msra.mxu0 %v2039_v23  ;;  %v2121_v23 = vld [vmem:[#allocation6 + $0xf0] ss:$8 sps:$4 sm:$0xff]  }
  0xe7   :  { %1140 = vmatprep.subr.bf16.mxu0 %v2044_v24  ;;  %v262_v24 = vld [vmem:[%s2625_s1] sm:$0xff] }
  0xea   :  { %1141 = vmatpush1.bf16.msra.mxu0 %v2042_v25  ;;  %v270_v25 = vpack.c.bf16 %v262_v24, %v262_v24  ;;  %v2149_v24 = vld [vmem:[%s2637_s13 + $0x8] sm:$0xff]  }
  0xeb   :  { %1142 = vmatprep.subr.bf16.mxu0 %v2047_v26  ;;  %v2124_v26 = vld [vmem:[%s2632_s8 + $0x40] sm:$0xff]  }
  0xee   :  { %1143 = vmatpush1.bf16.msra.mxu0 %v2045_v27  ;;  %v2125_v27 = vld [vmem:[%s2632_s8] sm:$0xff]  }
  0xef   :  { %1144 = vmatprep.subr.bf16.mxu0 %v2050_v28  ;;  %v2126_v28 = vld [vmem:[%s2632_s8 + $0x48] sm:$0xff]  }
  0xf2   :  { %1145 = vmatpush1.bf16.msra.mxu0 %v2048_v29  ;;  %v2127_v29 = vld [vmem:[%s2632_s8 + $0x8] sm:$0xff]  }
  0xf3   :  { %1146 = vmatprep.subr.bf16.mxu0 %v2053_v30  ;;  %v2128_v30 = vld [vmem:[%s2632_s8 + $0x50] sm:$0xff]  }
  0xf6   :  { %1147 = vmatpush1.bf16.msra.mxu0 %v2051_v31  ;;  %v2129_v31 = vld [vmem:[%s2632_s8 + $0x10] sm:$0xff]  }
  0xf7   :  { %1148 = vmatprep.subr.bf16.mxu0 %v2056_v32  ;;  %v2130_v32 = vld [vmem:[%s2632_s8 + $0x58] sm:$0xff]  }
  0xfa   :  { %1149 = vmatpush1.bf16.msra.mxu0 %v2054_v33  ;;  %v2131_v33 = vld [vmem:[%s2632_s8 + $0x18] sm:$0xff]  }
  0xfb   :  { %1150 = vmatprep.subr.bf16.mxu0 %v2059_v34  ;;  %v2132_v34 = vld [vmem:[%s2632_s8 + $0x60] sm:$0xff]  }
  0xfe   :  { %1151 = vmatpush1.bf16.msra.mxu0 %v2057_v35  ;;  %v2133_v35 = vld [vmem:[%s2632_s8 + $0x20] sm:$0xff]  }
  0xff   :  { %1152 = vmatprep.subr.bf16.mxu0 %v2062_v36  ;;  %v2134_v36 = vld [vmem:[%s2632_s8 + $0x68] sm:$0xff]  }
 0x102   :  { %1153 = vmatpush1.bf16.msra.mxu0 %v2060_v37  ;;  %v2135_v37 = vld [vmem:[%s2632_s8 + $0x28] sm:$0xff]  }
 0x103   :  { %1154 = vmatprep.subr.bf16.mxu0 %v2065_v38  ;;  %v2136_v38 = vld [vmem:[%s2632_s8 + $0x70] sm:$0xff]  }
 0x106   :  { %1155 = vmatpush1.bf16.msra.mxu0 %v2063_v39  ;;  %v2137_v39 = vld [vmem:[%s2632_s8 + $0x30] sm:$0xff]  }
 0x107   :  { %1156 = vmatprep.subr.bf16.mxu0 %v2068_v40  ;;  %v2138_v40 = vld [vmem:[%s2632_s8 + $0x78] sm:$0xff]  }
 0x10a   :  { %1157 = vmatpush1.bf16.msra.mxu0 %v2066_v41  ;;  %v2139_v41 = vld [vmem:[%s2632_s8 + $0x38] sm:$0xff]  }
 0x10b   :  { %1158 = vmatprep.subr.bf16.mxu0 %v2071_v42 }
 0x10e   :  { %1159 = vmatpush1.bf16.msra.mxu0 %v2069_v43 }
 0x111   :  { %1169 = vmatmul.mubr.bf16.vlgmr.msra.gmra.mrb[4].mxu0 %v276_v45 }
 0x134   :  { %v170_v47 = vpop.f32.mrb[0].mxu0 }
 0x135   :  { %v171_v48 = vadd.f32 %v1639_v46, %v170_v47  ;;  %v1858_v49 = vpop.f32.mrb[1].mxu0 }
 0x136   :  { %v173_v50 = vpop.f32.mrb[2].mxu0 }
 0x137   :  { %2156 = vtanh.f32 %v171_v48  ;;  %v1859_v51 = vpop.f32.mrb[3].mxu0  ;;  %v400_v50 = vlaneseq }
 0x139   :  { %v401_v51 = vshrl.u32 %v400_v50, 7 }
 0x13b   :  { %v402_v52 = vsub.s32 0, %v401_v51 }
 0x141   :  { %v2157_v53 = vpop.eup %2156 }
 0x142   :  { %v177_v56 = vpack.c.bf16 %v2157_v53, %v2157_v53  ;;  %v398_v53 = vld [vmem:[%s2631_s7] sm:$0x3] }
 0x144   :  { %1869 = vmatmul.mubr.msk.bf16.vlgmr.msra.gmra.mrb[0].mxu1 %vm217_vm2, %v177_v56 }
 0x145   :  { %1014 = vmatpush1.bf16.msra.mxu1 %v2076_v54  ;;  %1045 = vmatprep.mubr.bf16.mxu1 %v271_v55  ;;  %v406_v54 = vsub.s32 1, %v401_v51  ;;  %v403_v55 = vrot.slane %v398_v53, %v402_v52 }
 0x146   :  { %1015 = vmatprep.subr.bf16.mxu1 %v2081_v57 }
 0x147   :  { %v407_v56 = vrot.slane %v398_v53, %v406_v54 }
 0x149   :  { %1016 = vmatpush1.bf16.msra.mxu1 %v2079_v58 }
 0x14a   :  { %1017 = vmatprep.subr.bf16.mxu1 %v2084_v59 }
 0x14d   :  { %1018 = vmatpush1.bf16.msra.mxu1 %v2082_v60 }
 0x14e   :  { %1019 = vmatprep.subr.bf16.mxu1 %v2087_v61 }
 0x151   :  { %1020 = vmatpush1.bf16.msra.mxu1 %v2085_v62 }
 0x152   :  { %1021 = vmatprep.subr.bf16.mxu1 %v2090_v63 }
 0x155   :  { %1022 = vmatpush1.bf16.msra.mxu1 %v2088_v1 }
 0x156   :  { %1023 = vmatprep.subr.bf16.mxu1 %v2093_v2 }
 0x159   :  { %1024 = vmatpush1.bf16.msra.mxu1 %v2091_v3 }
 0x15a   :  { %1025 = vmatprep.subr.bf16.mxu1 %v2096_v4 }
 0x15d   :  { %1026 = vmatpush1.bf16.msra.mxu1 %v2094_v5  ;;  %v2140_v5 = vld [vmem:[%s2634_s10] sm:$0xff]  }
 0x15e   :  { %1027 = vmatprep.subr.bf16.mxu1 %v2099_v6 }
 0x161   :  { %1028 = vmatpush1.bf16.msra.mxu1 %v2097_v7  ;;  %v2141_v7 = vld [vmem:[%s2634_s10 + $0x8] sm:$0xff]  }
 0x162   :  { %1029 = vmatprep.subr.bf16.mxu1 %v2102_v8  ;;  %v2142_v8 = vld [vmem:[%s2634_s10 + $0x10] sm:$0xff]  }
 0x165   :  { %1030 = vmatpush1.bf16.msra.mxu1 %v2100_v9  ;;  %v2143_v9 = vld [vmem:[%s2634_s10 + $0x18] sm:$0xff]  }
 0x166   :  { %1031 = vmatprep.subr.bf16.mxu1 %v2105_v10  ;;  %v2144_v10 = vld [vmem:[%s2634_s10 + $0x20] sm:$0xff]  }
 0x169   :  { %1032 = vmatpush1.bf16.msra.mxu1 %v2103_v11  ;;  %v2145_v11 = vld [vmem:[%s2634_s10 + $0x28] sm:$0xff]  }
 0x16a   :  { %1033 = vmatprep.subr.bf16.mxu1 %v2108_v12  ;;  %v2146_v12 = vld [vmem:[%s2634_s10 + $0x30] sm:$0xff]  }
 0x16d   :  { %1034 = vmatpush1.bf16.msra.mxu1 %v2106_v13  ;;  %v2147_v13 = vld [vmem:[%s2634_s10 + $0x38] sm:$0xff]  }
 0x16e   :  { %1035 = vmatprep.subr.bf16.mxu1 %v2111_v14 }
 0x171   :  { %1036 = vmatpush1.bf16.msra.mxu1 %v2109_v15  ;;  %v1769_v15 = vld [vmem:[%s2633_s9] ss:$0 sm:$0xff] }
 0x172   :  { %1037 = vmatprep.subr.bf16.mxu1 %v2114_v16 }
 0x175   :  { %1038 = vmatpush1.bf16.msra.mxu1 %v2112_v17 }
 0x176   :  { %1039 = vmatprep.subr.bf16.mxu1 %v2117_v18 }
 0x179   :  { %1040 = vmatpush1.bf16.msra.mxu1 %v2115_v19 }
 0x17a   :  { %1041 = vmatprep.subr.bf16.mxu1 %v2120_v20 }
 0x17d   :  { %1042 = vmatpush1.bf16.msra.mxu1 %v2118_v21 }
 0x17e   :  { %1043 = vmatprep.subr.bf16.mxu1 %v2123_v22  ;;  %v2148_v22 = vld [vmem:[%s2637_s13] sm:$0xff]  }
 0x181   :  { %1044 = vmatpush1.bf16.msra.mxu1 %v2121_v23 }
 0x182   :  { %1813 = vmatprep.subr.bf16.mxu1 %v2124_v26  ;;  %v2151_v26 = vld [vmem:[%s2637_s13 + $0x18] sm:$0xff]  }
 0x184   :  { %1046 = vmatmul.mubr.bf16.vlgmr.msra.gmra.mrb[4].mxu1 %v270_v25  ;;  %v2150_v25 = vld [vmem:[%s2637_s13 + $0x10] sm:$0xff]  }
 0x185   :  { %1814 = vmatpush3.bf16.msra.mxu1 %v2125_v27  ;;  %v1786_v27 = vld [vmem:[#allocation7] ss:$0 sm:$0xff] }
 0x186   :  { %1815 = vmatprep.subr.bf16.mxu1 %v2126_v28 }
 0x189   :  { %1816 = vmatpush3.bf16.msra.mxu1 %v2127_v29  ;;  %v1642_v29 = vld [vmem:[%s2629_s5] ss:$0 sm:$0xff] }
 0x18a   :  { %1817 = vmatprep.subr.bf16.mxu1 %v2128_v30 }
 0x18d   :  { %1818 = vmatpush3.bf16.msra.mxu1 %v2129_v31 }
 0x18e   :  { %1819 = vmatprep.subr.bf16.mxu1 %v2130_v32 }
 0x191   :  { %1820 = vmatpush3.bf16.msra.mxu1 %v2131_v33 }
 0x192   :  { %1821 = vmatprep.subr.bf16.mxu1 %v2132_v34 }
 0x195   :  { %1822 = vmatpush3.bf16.msra.mxu1 %v2133_v35 }
 0x196   :  { %1823 = vmatprep.subr.bf16.mxu1 %v2134_v36  ;;  %v2152_v36 = vld [vmem:[%s2636_s12] sm:$0xff]  }
 0x199   :  { %1824 = vmatpush3.bf16.msra.mxu1 %v2135_v37 }
 0x19a   :  { %1825 = vmatprep.subr.bf16.mxu1 %v2136_v38  ;;  %v2153_v38 = vld [vmem:[%s2636_s12 + $0x8] sm:$0xff]  }
 0x19d   :  { %1826 = vmatpush3.bf16.msra.mxu1 %v2137_v39  ;;  %v2154_v39 = vld [vmem:[%s2636_s12 + $0x10] sm:$0xff]  }
 0x19e   :  { %1827 = vmatprep.subr.bf16.mxu1 %v2138_v40  ;;  %v2155_v40 = vld [vmem:[%s2636_s12 + $0x18] sm:$0xff]  }
 0x1a1   :  { %1828 = vmatpush3.bf16.msra.mxu1 %v2139_v41 }
 0x1a2   :  { %1872 = vmatprep.subr.bf16.mxu1 %v2285_v0 }
 0x1e4   :  { %v1170_v42 = vpop.f32.mrb[4].mxu0 }
 0x1e5   :  { %v1172_v43 = vpop.f32.mrb[5].mxu0 }
 0x1e6   :  { %v1174_v44 = vpop.f32.mrb[6].mxu0 }
 0x1e7   :  { %v1175_v45 = vpop.f32.mrb[7].mxu0 }
 0x217   :  { %v2538_v46 = vpop.f32.mrb[0].mxu1 }
 0x218   :  { %v1870_v47 = vpop.f32.mrb[1].mxu1  ;;  %v256_v35 = vadd.f32 %v1642_v29, %v2538_v46 }
 0x219   :  { %v258_v48 = vpop.f32.mrb[2].mxu1 }
 0x21a   :  { %v1871_v49 = vpop.f32.mrb[3].mxu1  ;;  %2158 = vtanh.f32 %v256_v35  ;;  %v1805_v48 = vld [vmem:[#allocation9] ss:$0 sm:$0xff] }
 0x224   :  { %v2159_v41 = vpop.eup %2158 }
 0x257   :  { %v1047_v57 = vpop.f32.mrb[4].mxu1 }
 0x258   :  { %v1048_v58 = vadd.f32 %v1047_v57, %v403_v55  ;;  %v1049_v59 = vpop.f32.mrb[5].mxu1 }
 0x259   :  { %v1050_v60 = vadd.f32 %v1049_v59, %v407_v56  ;;  %v1051_v61 = vpop.f32.mrb[6].mxu1 }
 0x25a   :  { %v1917_v62 = vadd.f32 %v1170_v42, %v1048_v58  ;;  %v1052_v63 = vpop.f32.mrb[7].mxu1  ;;  %v1470_v42 = vpack.c.bf16 %v2159_v41, %v2159_v41 }
 0x25b   :  { %v1919_v1 = vadd.f32 %v1172_v43, %v1050_v60 }
 0x25c   :  { %v1177_v2 = vmax.f32 %v1917_v62, 0.0 }
 0x25d   :  { %v1178_v3 = vmax.f32 %v1919_v1, 0.0 }
 0x25e   :  { %v1179_v6 = vpack.c.bf16 %v1177_v2, %v1177_v2 }
 0x25f   :  { %v1180_v4 = vpack.c.bf16 %v1178_v3, %v1178_v3 }
 0x261   :  { %1348 = vmatprep.mubr.bf16.mxu1 %v1180_v4 }
 0x262   :  { %1349 = vmatmul.mubr.bf16.vlgmr.msra.gmra.mrb[8].mxu1 %v1179_v6 }
 0x263   :  { %1873 = vmatpush3.bf16.msra.mxu1 %v2140_v5  ;;  %1888 = vmatprep.mubr.msk.bf16.mxu1 %vm2286_vm0, %v2285_v0 }
 0x264   :  { %1874 = vmatprep.subr.bf16.mxu1 %v2285_v0 }
 0x267   :  { %1875 = vmatpush3.bf16.msra.mxu1 %v2141_v7 }
 0x268   :  { %1876 = vmatprep.subr.bf16.mxu1 %v2285_v0 }
 0x26b   :  { %1877 = vmatpush3.bf16.msra.mxu1 %v2142_v8 }
 0x26c   :  { %1878 = vmatprep.subr.bf16.mxu1 %v2285_v0 }
 0x26f   :  { %1879 = vmatpush3.bf16.msra.mxu1 %v2143_v9 }
 0x270   :  { %1880 = vmatprep.subr.bf16.mxu1 %v2285_v0 }
 0x273   :  { %1881 = vmatpush3.bf16.msra.mxu1 %v2144_v10 }
 0x274   :  { %1882 = vmatprep.subr.bf16.mxu1 %v2285_v0 }
 0x277   :  { %1883 = vmatpush3.bf16.msra.mxu1 %v2145_v11 }
 0x278   :  { %1884 = vmatprep.subr.bf16.mxu1 %v2285_v0 }
 0x27b   :  { %1885 = vmatpush3.bf16.msra.mxu1 %v2146_v12 }
 0x27c   :  { %1886 = vmatprep.subr.bf16.mxu1 %v2285_v0 }
 0x27f   :  { %1887 = vmatpush3.bf16.msra.mxu1 %v2147_v13 }
 0x280   :  { %1892 = vmatprep.subr.bf16.mxu1 %v2285_v0 }
 0x335   :  { %v1829_v14 = vpop.f32.mrb[8].mxu1 }
 0x336   :  { %v1830_v16 = vpop.f32.mrb[9].mxu1 }
 0x337   :  { %v1831_v17 = vadd.f32 %v1830_v16, %v1829_v14  ;;  %v1832_v18 = vpop.f32.mrb[10].mxu1 }
 0x338   :  { %v1833_v19 = vpop.f32.mrb[11].mxu1 }
 0x339   :  { %v1351_v20 = vadd.f32 %v1831_v17, %v1769_v15 }
 0x33b   :  { %v1356_v21 = vmax.f32 %v1351_v20, 0.0 }
 0x33d   :  { %v1357_v23 = vpack.c.bf16 %v1356_v21, %v1356_v21 }
 0x33f   :  { %1889 = vmatmul.mubr.bf16.vlgmr.msra.gmra.mrb[12].mxu1 %v1357_v23 }
 0x340   :  { %1893 = vmatpush3.bf16.msra.mxu1 %v2148_v22  ;;  %1900 = vmatprep.mubr.msk.bf16.mxu1 %vm2286_vm0, %v2285_v0 }
 0x341   :  { %1894 = vmatprep.subr.bf16.mxu1 %v2285_v0 }
 0x344   :  { %1895 = vmatpush3.bf16.msra.mxu1 %v2149_v24 }
 0x345   :  { %1896 = vmatprep.subr.bf16.mxu1 %v2285_v0 }
 0x348   :  { %1897 = vmatpush3.bf16.msra.mxu1 %v2150_v25 }
 0x349   :  { %1898 = vmatprep.subr.bf16.mxu1 %v2285_v0 }
 0x34c   :  { %1899 = vmatpush3.bf16.msra.mxu1 %v2151_v26 }
 0x34d   :  { %1904 = vmatprep.subr.bf16.mxu1 %v2285_v0 }
 0x412   :  { %v1463_v28 = vpop.f32.mrb[12].mxu1 }
 0x413   :  { %v1464_v30 = vadd.f32 %v1786_v27, %v1463_v28  ;;  %v1890_v31 = vpop.f32.mrb[13].mxu1 }
 0x414   :  { %v1466_v32 = vpop.f32.mrb[14].mxu1 }
 0x415   :  { %v1469_v33 = vmax.f32 %v1464_v30, 0.0  ;;  %v1891_v34 = vpop.f32.mrb[15].mxu1 }
 0x417   :  { %v1479_v37 = vpack.c.bf16 %v1469_v33, %v1469_v33 }
 0x419   :  { %1901 = vmatmul.mubr.msk.bf16.vlgmr.msra.gmra.mrb[16].mxu1 %vm217_vm2, %v1479_v37 }
 0x41a   :  { %1905 = vmatpush3.bf16.msra.mxu1 %v2152_v36  ;;  %1912 = vmatprep.mubr.msk.bf16.mxu1 %vm2286_vm0, %v2285_v0 }
 0x41b   :  { %1906 = vmatprep.subr.bf16.mxu1 %v2285_v0 }
 0x41e   :  { %1907 = vmatpush3.bf16.msra.mxu1 %v2153_v38 }
 0x41f   :  { %1908 = vmatprep.subr.bf16.mxu1 %v2285_v0 }
 0x422   :  { %1909 = vmatpush3.bf16.msra.mxu1 %v2154_v39 }
 0x423   :  { %1910 = vmatprep.subr.bf16.mxu1 %v2285_v0 }
 0x426   :  { %1911 = vmatpush3.bf16.msra.mxu1 %v2155_v40 }
 0x429   :  { %1913 = vmatmul.mubr.msk.bf16.vlgmr.msra.gmra.mrb[20].mxu1 %vm217_vm2, %v1470_v42 }
 0x4ec   :  { %v1549_v43 = vpop.f32.mrb[16].mxu1 }
 0x4ed   :  { %v1902_v44 = vpop.f32.mrb[17].mxu1 }
 0x4ee   :  { %v1552_v45 = vpop.f32.mrb[18].mxu1 }
 0x4ef   :  { %v1903_v46 = vpop.f32.mrb[19].mxu1 }
 0x4fc   :  { %v1616_v47 = vpop.f32.mrb[20].mxu1 }
 0x4fd   :  { %v1617_v49 = vadd.f32 %v1616_v47, %v1549_v43  ;;  %v1914_v50 = vpop.f32.mrb[21].mxu1 }
 0x4fe   :  { %v1619_v51 = vpop.f32.mrb[22].mxu1 }
 0x4ff   :  { %v1629_v52 = vadd.f32 %v1805_v48, %v1617_v49  ;;  %v1915_v53 = vpop.f32.mrb[23].mxu1 }
 0x501   :  { %1631 = vst.msk [vmem:[%s2639_s15] sm:$0xff] %vm1630_vm3, %v1629_v52 }
 0x502   :  { %1636 = vsyncpa [#allocation3], 1 }
 0x503   :  { %1637 = vsyncpa [#allocation5], 1 }
 0x504   :  { %1638 = vsyncpa [#allocation8], 1 }

</bundles_post_ra>
